<compile_context>
chip_gen: v7x
topology: tpu7x:2x2x1
jax: 0.10.0
libtpu: 0.0.40
codegen_flags: <defaults>
</compile_context>

<pallas_src>
import jax
import jax.numpy as jnp
from jax.experimental import pallas as pl
from jax.experimental.pallas import tpu as pltpu


_VMEM_TARGET_BYTES = 24 * 1024 * 1024   # conservative live-block budget (fits v7x's 64 MiB)
_VMEM_LIMIT_BYTES = 48 * 1024 * 1024    # scoped limit: above v5e/v6e defaults, below v7x physical


def _round_up(x: int, m: int) -> int:
    return ((x + m - 1) // m) * m


def _choose_tiles(S: int, H: int, tok_item: int):
    """Returns (TB, TS, TH, S_pad, H_pad)."""
    TB = 8
    mask_item = 4  # mask is cast to f32 in the wrapper (tiny array)
    H128 = _round_up(H, 128)
    S8 = _round_up(S, 8)

    def need(ts, th):
        # double-buffered token block + double-buffered mask block + output block(s)
        return 2 * TB * ts * (th * tok_item + mask_item) + 2 * TB * th * tok_item

    # Candidate hidden tiles: multiples of 128, padding overhead of H kept <= 12.5%.
    ths = [t for t in (8192, 4096, 2048, 1024, 512, 256, 128)
           if t <= H128 and (_round_up(H128, t) - H128) * 8 <= H128]
    # 128 always divides H128, so ths is never empty.

    # Regime A: whole (padded) sequence in one block, widest TH that fits.
    for th in ths:
        if need(S8, th) <= _VMEM_TARGET_BYTES:
            return TB, S8, th, S8, _round_up(H128, th)

    # Regime B: tile the sequence (TS multiple of 128 to keep the 2-D mask block
    # lane-aligned) and accumulate a running max across an innermost seq grid axis.
    for th in ths:
        fixed = 2 * TB * th * tok_item
        per_ts = 2 * TB * (th * tok_item + mask_item)
        ts = ((_VMEM_TARGET_BYTES - fixed) // per_ts) // 128 * 128
        if ts >= 128:
            ts = min(ts, _round_up(S8, 128))
            return TB, ts, th, _round_up(S, ts), _round_up(H128, th)

    # Last resort: smallest lane-aligned tiles.
    return TB, 128, 128, _round_up(S, 128), H128


def _splade_pool_kernel(tok_ref, mask_ref, out_ref):
    # tok_ref:  (TB, TS, TH)  token embeddings tile (native dtype)
    # mask_ref: (TB, TS)      attention mask tile (f32)
    # out_ref:  (TB, TH)      running max over the seq grid axis
    s = pl.program_id(2)

    x = tok_ref[...].astype(jnp.float32)
    m = mask_ref[...].astype(jnp.float32)
    act = jnp.log1p(jnp.maximum(x, 0.0)) * m[:, :, None]   # log(1 + relu(x)) * mask
    blk_max = jnp.max(act, axis=1)                          # reduce over the seq tile

    @pl.when(s == 0)
    def _():
        # Values are >= 0, so 0 is a valid identity for the running max.
        out_ref[...] = jnp.zeros_like(out_ref)

    out_ref[...] = jnp.maximum(out_ref[...], blk_max.astype(out_ref.dtype))


def splade_pooling(token_embeddings: jax.Array, attention_mask: jax.Array) -> jax.Array:
    """token_embeddings: [B, S, H] float; attention_mask: [B, S] (any numeric dtype).
    Returns sentence_embedding: [B, H] with the dtype of token_embeddings."""
    B, S, H = token_embeddings.shape
    dtype = token_embeddings.dtype
    tok_item = jnp.dtype(dtype).itemsize

    TB, TS, TH, S_pad, H_pad = _choose_tiles(S, H, tok_item)
    B_pad = _round_up(B, TB)

    # Zero-pad to tile multiples (padded positions have mask 0 / value 0, so they
    # contribute 0 to the max and are sliced off afterwards).
    # TODO(synk): for very large H the pad materializes one extra HBM copy; an
    # in-kernel tail mask could avoid it.
    tok = token_embeddings
    if (B_pad, S_pad, H_pad) != (B, S, H):
        tok = jnp.pad(tok, ((0, B_pad - B), (0, S_pad - S), (0, H_pad - H)))
    mask = attention_mask.astype(jnp.float32)
    if (B_pad, S_pad) != (B, S):
        mask = jnp.pad(mask, ((0, B_pad - B), (0, S_pad - S)))

    grid = (B_pad // TB, H_pad // TH, S_pad // TS)

    out = pl.pallas_call(
        _splade_pool_kernel,
        out_shape=jax.ShapeDtypeStruct((B_pad, H_pad), dtype),
        grid_spec=pltpu.PrefetchScalarGridSpec(
            num_scalar_prefetch=0,
            grid=grid,
            in_specs=[
                pl.BlockSpec((TB, TS, TH), lambda b, h, s: (b, s, h)),
                pl.BlockSpec((TB, TS), lambda b, h, s: (b, s)),
            ],
            out_specs=pl.BlockSpec((TB, TH), lambda b, h, s: (b, h)),
        ),
        compiler_params=pltpu.CompilerParams(
            dimension_semantics=("parallel", "parallel", "arbitrary"),
            vmem_limit_bytes=_VMEM_LIMIT_BYTES,
        ),
        cost_estimate=pl.CostEstimate(
            flops=3 * B * S * H,
            transcendentals=B * S * H,
            bytes_accessed=B * S * H * tok_item + B * S * 4 + B * H * tok_item,
        ),
    )(tok, mask)

    return out[:B, :H]


if __name__ == "__main__":
    # Small shapes consistent with the module: batch=2, seq=8, hidden=32.
    B, S, H = 2, 8, 32
    key = jax.random.PRNGKey(0)
    k1, _ = jax.random.split(key)

    token_embeddings = jax.random.normal(k1, (B, S, H), dtype=jnp.float32)
    # Binary attention mask with a few padded positions (last 2 tokens of row 1).
    attention_mask = jnp.ones((B, S), dtype=jnp.int32).at[1, -2:].set(0)

    features = {"token_embeddings": token_embeddings, "attention_mask": attention_mask}

    sentence_embedding = splade_pooling(
        features["token_embeddings"], features["attention_mask"]
    )
    sentence_embedding = jax.block_until_ready(sentence_embedding)
    features["sentence_embedding"] = sentence_embedding

    # Pure-JAX reference check of the exact PyTorch semantics.
    ref = jnp.max(
        jnp.log1p(jax.nn.relu(token_embeddings))
        * attention_mask.astype(jnp.float32)[..., None],
        axis=1,
    )
    assert sentence_embedding.shape == (B, H)
    assert jnp.allclose(sentence_embedding, ref, atol=1e-6, rtol=1e-6)

    print("KERNEL_OK")
</pallas_src>

<mosaic_0001>
module attributes {stable_mosaic.version = 11 : i64} {
  func.func @_splade_pool_kernel(%arg0: i32, %arg1: i32, %arg2: i32, %arg3: memref<8x8x128xf32, #tpu.memory_space<vmem>>, %arg4: memref<8x8xf32, #tpu.memory_space<vmem>>, %arg5: memref<8x128xf32, #tpu.memory_space<vmem>>) attributes {dimension_semantics = [#tpu.dimension_semantics<parallel>, #tpu.dimension_semantics<parallel>, #tpu.dimension_semantics<arbitrary>], iteration_bounds = array<i64: 1, 1, 1>, scalar_prefetch = 0 : i64, scratch_operands = 0 : i64, tpu.core_type = #tpu.core_type<tc>, window_params = [{transform_indices = @transform_0, window_bounds = array<i64: 8, 8, 128>}, {transform_indices = @transform_1, window_bounds = array<i64: 8, 8>}, {transform_indices = @transform_2, window_bounds = array<i64: 8, 128>}]} {
    %c0 = arith.constant 0 : index
    %c0_0 = arith.constant 0 : index
    %c0_1 = arith.constant 0 : index
    %0 = vector.load %arg3[%c0, %c0_0, %c0_1] : memref<8x8x128xf32, #tpu.memory_space<vmem>>, vector<8x8x128xf32>
    %c0_2 = arith.constant 0 : index
    %c0_3 = arith.constant 0 : index
    %1 = vector.load %arg4[%c0_2, %c0_3] : memref<8x8xf32, #tpu.memory_space<vmem>>, vector<8x8xf32>
    %cst = arith.constant 0.000000e+00 : f32
    %2 = vector.broadcast %cst : f32 to vector<8x8x128xf32>
    %3 = arith.maximumf %0, %2 : vector<8x8x128xf32>
    %4 = math.log1p %3 : vector<8x8x128xf32>
    %5 = vector.shape_cast %1 : vector<8x8xf32> to vector<8x8x1xf32>
    %6 = vector.broadcast %5 : vector<8x8x1xf32> to vector<8x8x128xf32>
    %7 = arith.mulf %4, %6 : vector<8x8x128xf32>
    %cst_4 = arith.constant dense<0xFF800000> : vector<8x128xf32>
    %8 = vector.multi_reduction <maximumf>, %7, %cst_4 [1] : vector<8x8x128xf32> to vector<8x128xf32>
    %c0_i32 = arith.constant 0 : i32
    %9 = arith.cmpi eq, %arg2, %c0_i32 : i32
    %10 = arith.extui %9 : i1 to i32
    %c0_i32_5 = arith.constant 0 : i32
    %11 = arith.cmpi ne, %10, %c0_i32_5 : i32
    scf.if %11 {
      %cst_10 = arith.constant 0.000000e+00 : f32
      %15 = vector.broadcast %cst_10 : f32 to vector<8x128xf32>
      %c0_11 = arith.constant 0 : index
      %c0_12 = arith.constant 0 : index
      %16 = vector.load %arg5[%c0_11, %c0_12] : memref<8x128xf32, #tpu.memory_space<vmem>>, vector<8x128xf32>
      tpu.vector_store %arg5[%c0_11, %c0_12], %15 {strides = array<i32>} : memref<8x128xf32, #tpu.memory_space<vmem>>, vector<8x128xf32>,
    } else {
    }
    %c0_6 = arith.constant 0 : index
    %c0_7 = arith.constant 0 : index
    %12 = vector.load %arg5[%c0_6, %c0_7] : memref<8x128xf32, #tpu.memory_space<vmem>>, vector<8x128xf32>
    %13 = arith.maximumf %12, %8 : vector<8x128xf32>
    %c0_8 = arith.constant 0 : index
    %c0_9 = arith.constant 0 : index
    %14 = vector.load %arg5[%c0_8, %c0_9] : memref<8x128xf32, #tpu.memory_space<vmem>>, vector<8x128xf32>
    tpu.vector_store %arg5[%c0_8, %c0_9], %13 {strides = array<i32>} : memref<8x128xf32, #tpu.memory_space<vmem>>, vector<8x128xf32>,
    return
  }
  func.func @transform_0(%arg0: i32, %arg1: i32, %arg2: i32) -> (i32, i32, i32) {
    %c0_i32 = arith.constant 0 : i32
    return %arg0, %arg2, %arg1 : i32, i32, i32
  }
  func.func @transform_1(%arg0: i32, %arg1: i32, %arg2: i32) -> (i32, i32) {
    %c0_i32 = arith.constant 0 : i32
    return %arg0, %arg2 : i32, i32
  }
  func.func @transform_2(%arg0: i32, %arg1: i32, %arg2: i32) -> (i32, i32) {
    %c0_i32 = arith.constant 0 : i32
    return %arg0, %arg1 : i32, i32
  }
}

</mosaic_0001>

<bundles_post_ra>
// kernel: tpu_custom_call.1
= control target key start
LH: loop header
LB: loop body
LE: loop exit
PB: predicated region body
PF: predicated region fallthrough
CT: control target
= control target key end

     0   :  { %7 = vsyncpa [#allocation3], 0  ;;  %s508_s0 = inlined_call_operand.hbm [shape: f32[8,8,128], index: 0, kind: input, shape index: {}]   ;;  %s509_s1 = inlined_call_operand.hbm [shape: f32[8,8], index: 1, kind: input, shape index: {}]   ;;  %s510_s2 = inlined_call_operand.hbm [shape: f32[8,128], index: 2, kind: output, shape index: {}]  }
   0x1   :  { %8 = vsyncpa [#allocation6], 0 }
   0x2   :  { %9 = vsyncpa [#allocation4], 0  ;;  %s380_s9 = smov [#allocation2]   ;;  %s308_s13 = scalar_lea.hbm %s508_s0, 1024 }
   0x3   :  { %s15_s10 = sshll.u32 %s380_s9, 4  ;;  %p309_p0 = scmp.ne.s32.totalorder %s508_s0, %s308_s13  ;;  %s16_s10 = int_to_ptr.vmem [resolvable:$true] %s15_s10 }
   0x4   :  { %p312_p1 = scmp.lt.u32.totalorder %s308_s13, %s508_s0 }
   0x6   :  { %p314_p2 = pnand %p312_p1, %p309_p0 }
   0x8   :  { %317 = shalt.err (!%p314_p2)
}
   0x9   :  { %s318_s18 = scalar_lea.vmem %s16_s10, 1024  ;;  %p323_p4 = scmp.lt.s32.totalorder %s16_s10, %s16_s10 }
   0xa   :  { %p319_p3 = scmp.ne.s32.totalorder %s16_s10, %s318_s18  ;;  %p324_p5 = scmp.lt.s32.totalorder %s318_s18, %s318_s18 }
   0xc   :  { %p325_p6 = por %p324_p5, %p323_p4 }
   0xe   :  { %p326_p7 = pnand %p325_p6, %p319_p3 }
  0x10   :  { %329 = shalt.err (!%p326_p7)
}
  0x11   :  { %s381_s19 = smov 128   ;;  %s382_s20 = smov 8  }
  0x12   :  { %21 = dma.hbm_to_vmem [thread:$0]  %s508_s0, 1024, %s16_s10, [#allocation3], %s381_s19, %s381_s19, %s382_s20  }
  0x13   :  { %s383_s23 = smov [#allocation5]   ;;  %s330_s27 = scalar_lea.hbm %s509_s1, 128 }
  0x14   :  { %s28_s24 = sshll.u32 %s383_s23, 4  ;;  %p331_p8 = scmp.ne.s32.totalorder %s509_s1, %s330_s27  ;;  %s29_s24 = int_to_ptr.vmem [resolvable:$true] %s28_s24 }
  0x15   :  { %p334_p9 = scmp.lt.u32.totalorder %s330_s27, %s509_s1 }
  0x17   :  { %p336_p10 = pnand %p334_p9, %p331_p8 }
  0x19   :  { %339 = shalt.err (!%p336_p10)
}
  0x1a   :  { %s340_s4 = scalar_lea.vmem %s29_s24, 128  ;;  %p345_p12 = scmp.lt.s32.totalorder %s29_s24, %s29_s24 }
  0x1b   :  { %p341_p11 = scmp.ne.s32.totalorder %s29_s24, %s340_s4  ;;  %p346_p13 = scmp.lt.s32.totalorder %s340_s4, %s340_s4 }
  0x1d   :  { %p347_p0 = por %p346_p13, %p345_p12 }
  0x1f   :  { %p348_p1 = pnand %p347_p0, %p341_p11 }
  0x21   :  { %351 = shalt.err (!%p348_p1)
}
  0x22   :  { %31 = dma.hbm_to_vmem [thread:$0]  %s509_s1, 128, %s29_s24, [#allocation6]  }
  0x23   :  { %374 = dma.done.wait [#allocation3], 1024  }
  0x24   :  { %375 = vsyncadd [#allocation3], 4294966272 }
  0x25   :  { %376 = dma.done.wait [#allocation6], 128  }
  0x26   :  { %377 = vsyncadd [#allocation6], 4294967168  ;;  %v127_v0 = vlaneseq  ;;  %v46_v6 = vld [vmem:[#allocation5] sm:$0xff]  ;;  %v40_v19 = vld [vmem:[#allocation2 + $0x10] sm:$0xff]  ;;  %vm253_vm8 = vcmask 1041409   ;;  %vm255_vm9 = vcmask 1042434  }
  0x27   :  { %v38_v20 = vld [vmem:[#allocation2] sm:$0xff]  ;;  %v49_v21 = vmax.f32 %v40_v19, 0.0  ;;  %v41_v23 = vld [vmem:[#allocation2 + $0x18] sm:$0xff]  ;;  %v39_v24 = vld [vmem:[#allocation2 + $0x8] sm:$0xff]  ;;  %vm257_vm10 = vcmask 1043459   ;;  %vm259_vm11 = vcmask 1044484  }
  0x28   :  { %v128_v1 = vshrl.u32 %v127_v0, 7  ;;  %v47_v22 = vmax.f32 %v38_v20, 0.0  ;;  %v50_v26 = vmax.f32 %v41_v23, 0.0  ;;  %v48_v28 = vmax.f32 %v39_v24, 0.0  ;;  %v43_v29 = vld [vmem:[#allocation2 + $0x28] sm:$0xff]  ;;  %v42_v30 = vld [vmem:[#allocation2 + $0x20] sm:$0xff] }
  0x29   :  { %v73_v25 = vadd.f32 1.0, %v49_v21  ;;  %v424_v32 = vmax.f32 %v43_v29, 0.0  ;;  %v426_v34 = vmax.f32 %v42_v30, 0.0  ;;  %v45_v35 = vld [vmem:[#allocation2 + $0x38] sm:$0xff]  ;;  %v44_v36 = vld [vmem:[#allocation2 + $0x30] sm:$0xff]  ;;  %v76_v41 = vmul.f32 -0.5, %v49_v21 }
  0x2a   :  { %v143_v2 = vsub.s32 2, %v128_v1  ;;  %v129_v3 = vsub.s32 0, %v128_v1  ;;  %v150_v4 = vsub.s32 3, %v128_v1  ;;  %v136_v5 = vsub.s32 1, %v128_v1  ;;  %s384_s1 = smov [#allocation7]  }
  0x2b   :  { %v164_v11 = vsub.s32 5, %v128_v1  ;;  %v157_v12 = vsub.s32 4, %v128_v1  ;;  %v178_v15 = vsub.s32 7, %v128_v1  ;;  %v171_v16 = vsub.s32 6, %v128_v1  ;;  %s276_s6 = sshll.u32 %s384_s1, 4  ;;  %s277_s6 = int_to_ptr.vmem [resolvable:$true] %s276_s6 }
  0x2c   :  { %v144_v7 = vrot.slane %v46_v6, %v143_v2  ;;  %v130_v8 = vrot.slane %v46_v6, %v129_v3  ;;  %v151_v9 = vrot.slane %v46_v6, %v150_v4  ;;  %v137_v10 = vrot.slane %v46_v6, %v136_v5  ;;  %s352_s7 = scalar_lea.vmem %s277_s6, 128  ;;  %p357_p3 = scmp.lt.s32.totalorder %s277_s6, %s277_s6 }
  0x2d   :  { %v165_v13 = vrot.slane %v46_v6, %v164_v11  ;;  %v158_v14 = vrot.slane %v46_v6, %v157_v12  ;;  %v179_v17 = vrot.slane %v46_v6, %v178_v15  ;;  %v172_v18 = vrot.slane %v46_v6, %v171_v16  ;;  %p353_p2 = scmp.ne.s32.totalorder %s277_s6, %s352_s7  ;;  %p358_p4 = scmp.lt.s32.totalorder %s352_s7, %s352_s7 }
  0x2e   :  { %146 = vbcast.lane.b32.xlu1 %v144_v7, 256  ;;  %132 = vbcast.lane.b32.xlu0 %v130_v8, 256  ;;  %v55_v27 = vadd.f32 1.0, %v47_v22  ;;  %292 = vlog2.f32 %v73_v25  ;;  %v82_v31 = vadd.f32 1.0, %v50_v26  ;;  %v64_v33 = vadd.f32 1.0, %v48_v28 }
  0x2f   :  { %v100_v37 = vadd.f32 1.0, %v424_v32  ;;  %v429_v38 = vmax.f32 %v45_v35, 0.0  ;;  %v91_v39 = vadd.f32 1.0, %v426_v34  ;;  %v432_v40 = vmax.f32 %v44_v36, 0.0  ;;  %p359_p5 = por %p358_p4, %p357_p3 }
  0x30   :  { %294 = vlog2.f32 %v55_v27  ;;  %v58_v42 = vmul.f32 -0.5, %v47_v22  ;;  %v85_v43 = vmul.f32 -0.5, %v50_v26  ;;  %v67_v45 = vmul.f32 -0.5, %v48_v28 }
  0x31   :  { %296 = vlog2.f32 %v82_v31  ;;  %v118_v44 = vadd.f32 1.0, %v429_v38  ;;  %v109_v46 = vadd.f32 1.0, %v432_v40  ;;  %v77_v48 = vadd.f32 1.0, %v76_v41  ;;  %p360_p6 = pnand %p359_p5, %p353_p2 }
  0x32   :  { %153 = vbcast.lane.b32.xlu1 %v151_v9, 256  ;;  %139 = vbcast.lane.b32.xlu0 %v137_v10, 256  ;;  %298 = vlog2.f32 %v64_v33  ;;  %v59_v49 = vadd.f32 1.0, %v58_v42  ;;  %v79_v51 = vand.u32 2147483647, %v49_v21  ;;  %v86_v53 = vadd.f32 1.0, %v85_v43 }
  0x33   :  { %300 = vlog2.f32 %v100_v37  ;;  %v61_v52 = vand.u32 2147483647, %v47_v22  ;;  %v88_v54 = vand.u32 2147483647, %v50_v26  ;;  %v68_v55 = vadd.f32 1.0, %v67_v45 }
  0x34   :  { %302 = vlog2.f32 %v91_v39  ;;  %v103_v56 = vmul.f32 -0.5, %v424_v32  ;;  %v94_v57 = vmul.f32 -0.5, %v426_v34  ;;  %v78_v60 = vmul.f32 %v77_v48, %v49_v21 }
  0x35   :  { %304 = vlog2.f32 %v118_v44  ;;  %v60_v62 = vmul.f32 %v59_v49, %v47_v22  ;;  %vm438_vm0 = vcmp.lt.f32.partialorder %v79_v51, 0.0004427343  ;;  %vm442_vm1 = vcmp.lt.f32.partialorder %v61_v52, 0.0004427343 }
  0x36   :  { %167 = vbcast.lane.b32.xlu1 %v165_v13, 256  ;;  %160 = vbcast.lane.b32.xlu0 %v158_v14, 256  ;;  %306 = vlog2.f32 %v109_v46  ;;  %v70_v2 = vand.u32 2147483647, %v48_v28  ;;  %v87_v3 = vmul.f32 %v86_v53, %v50_v26  ;;  %v121_v4 = vmul.f32 -0.5, %v429_v38 }
  0x37   :  { %v112_v5 = vmul.f32 -0.5, %v432_v40  ;;  %vm448_vm2 = vcmp.lt.f32.partialorder %v88_v54, 0.0004427343  ;;  %v69_v7 = vmul.f32 %v68_v55, %v48_v28  ;;  %v104_v8 = vadd.f32 1.0, %v103_v56 }
  0x38   :  { %v293_v47 = vpop.eup %292  ;;  %v95_v9 = vadd.f32 1.0, %v94_v57  ;;  %vm456_vm3 = vcmp.lt.f32.partialorder %v70_v2, 0.0004427343  ;;  %v122_v21 = vadd.f32 1.0, %v121_v4  ;;  %v124_v42 = vand.u32 2147483647, %v429_v38 }
  0x39   :  { %v75_v59 = vmul.f32 0.6931472, %v293_v47  ;;  %v113_v22 = vadd.f32 1.0, %v112_v5  ;;  %v105_v25 = vmul.f32 %v104_v8, %v424_v32  ;;  %v115_v44 = vand.u32 2147483647, %v432_v40 }
  0x3a   :  { %181 = vbcast.lane.b32.xlu1 %v179_v17, 256  ;;  %174 = vbcast.lane.b32.xlu0 %v172_v18, 256  ;;  %v295_v50 = vpop.eup %294  ;;  %v106_v17 = vand.u32 2147483647, %v424_v32  ;;  %v97_v18 = vand.u32 2147483647, %v426_v34  ;;  %v96_v26 = vmul.f32 %v95_v9, %v426_v34  ;;  %v123_v41 = vmul.f32 %v122_v21, %v429_v38 }
  0x3b   :  { %v297_v58 = vpop.eup %296  ;;  %v57_v61 = vmul.f32 0.6931472, %v295_v50  ;;  %v81_v11 = vsel %vm438_vm0, %v78_v60, %v75_v59  ;;  %v114_v43 = vmul.f32 %v113_v22, %v432_v40  ;;  %vm484_vm6 = vcmp.lt.f32.partialorder %v124_v42, 0.0004427343 }
  0x3c   :  { %v299_v63 = vpop.eup %298  ;;  %v84_v13 = vmul.f32 0.6931472, %v297_v58  ;;  %vm468_vm4 = vcmp.lt.f32.partialorder %v106_v17, 0.0004427343  ;;  %vm472_vm5 = vcmp.lt.f32.partialorder %v97_v18, 0.0004427343 }
  0x3d   :  { %v301_v10 = vpop.eup %300  ;;  %v63_v12 = vsel %vm442_vm1, %v60_v62, %v57_v61  ;;  %v66_v14 = vmul.f32 0.6931472, %v299_v63  ;;  %vm488_vm7 = vcmp.lt.f32.partialorder %v115_v44, 0.0004427343  ;;  %vm261_vm12 = vcmask 1045509  }
  0x3e   :  { %v303_v15 = vpop.eup %302  ;;  %v90_v28 = vsel %vm448_vm2, %v87_v3, %v84_v13  ;;  %v102_v30 = vmul.f32 0.6931472, %v301_v10  ;;  %vm263_vm13 = vcmask 1046534   ;;  %vm265_vm14 = vcmask 1047559  }
  0x3f   :  { %v305_v27 = vpop.eup %304  ;;  %v72_v29 = vsel %vm456_vm3, %v69_v7, %v66_v14  ;;  %v93_v31 = vmul.f32 0.6931472, %v303_v15 }
  0x40   :  { %v307_v33 = vpop.eup %306  ;;  %v108_v49 = vsel %vm468_vm4, %v105_v25, %v102_v30  ;;  %v120_v51 = vmul.f32 0.6931472, %v305_v27 }
  0x41   :  { %v99_v50 = vsel %vm472_vm5, %v96_v26, %v93_v31  ;;  %v111_v52 = vmul.f32 0.6931472, %v307_v33 }
  0x42   :  { %v126_v3 = vsel %vm484_vm6, %v123_v41, %v120_v51 }
  0x43   :  { %v117_v4 = vsel %vm488_vm7, %v114_v43, %v111_v52 }
  0xa0   :  { %v147_v19 = vpop.permute.xlu1 %146  ;;  %v133_v20 = vpop.permute.xlu0 %132 }
  0xa1   :  { %v185_v23 = vmul.f32 %v147_v19, %v81_v11  ;;  %v183_v24 = vmul.f32 %v133_v20, %v63_v12 }
  0xa3   :  { %v203_v35 = vrot.slane %v185_v23, 4  ;;  %v191_v36 = vrot.slane %v183_v24, 4 }
  0xa4   :  { %v154_v34 = vpop.permute.xlu1 %153  ;;  %v140_v39 = vpop.permute.xlu0 %139 }
  0xa5   :  { %v204_v45 = vmax.f32 %v185_v23, %v203_v35  ;;  %v192_v46 = vmax.f32 %v183_v24, %v191_v36  ;;  %v186_v47 = vmul.f32 %v154_v34, %v90_v28  ;;  %v184_v48 = vmul.f32 %v140_v39, %v72_v29 }
  0xa7   :  { %v205_v53 = vrot.slane %v204_v45, 2  ;;  %v193_v54 = vrot.slane %v192_v46, 2  ;;  %v209_v55 = vrot.slane %v186_v47, 4  ;;  %v197_v38 = vrot.slane %v184_v48, 4 }
  0xa8   :  { %v168_v56 = vpop.permute.xlu1 %167  ;;  %v161_v57 = vpop.permute.xlu0 %160 }
  0xa9   :  { %v206_v59 = vmax.f32 %v204_v45, %v205_v53  ;;  %v194_v60 = vmax.f32 %v192_v46, %v193_v54  ;;  %v210_v61 = vmax.f32 %v186_v47, %v209_v55  ;;  %v198_v62 = vmax.f32 %v184_v48, %v197_v38 }
  0xaa   :  { %v188_v63 = vmul.f32 %v168_v56, %v108_v49  ;;  %v187_v0 = vmul.f32 %v161_v57, %v99_v50 }
  0xab   :  { %v211_v1 = vrot.slane %v210_v61, 2  ;;  %v199_v2 = vrot.slane %v198_v62, 2  ;;  %v207_v9 = vrot.slane %v206_v59, 1  ;;  %v195_v10 = vrot.slane %v194_v60, 1 }
  0xac   :  { %v221_v5 = vrot.slane %v188_v63, 4  ;;  %v215_v6 = vrot.slane %v187_v0, 4  ;;  %v182_v7 = vpop.permute.xlu1 %181  ;;  %v175_v8 = vpop.permute.xlu0 %174 }
  0xad   :  { %v212_v11 = vmax.f32 %v210_v61, %v211_v1  ;;  %v200_v12 = vmax.f32 %v198_v62, %v199_v2  ;;  %v190_v15 = vmul.f32 %v182_v7, %v126_v3  ;;  %v189_v16 = vmul.f32 %v175_v8, %v117_v4 }
  0xae   :  { %v222_v13 = vmax.f32 %v188_v63, %v221_v5  ;;  %v216_v14 = vmax.f32 %v187_v0, %v215_v6  ;;  %v208_v23 = vmax.f32 %v206_v59, %v207_v9  ;;  %v196_v24 = vmax.f32 %v194_v60, %v195_v10 }
  0xaf   :  { %v213_v17 = vrot.slane %v212_v11, 1  ;;  %v201_v18 = vrot.slane %v200_v12, 1  ;;  %v233_v21 = vrot.slane %v190_v15, 4  ;;  %v227_v22 = vrot.slane %v189_v16, 4 }
  0xb0   :  { %v223_v19 = vrot.slane %v222_v13, 2  ;;  %v217_v20 = vrot.slane %v216_v14, 2 }
  0xb1   :  { %v202_v25 = vmax.f32 %v200_v12, %v201_v18  ;;  %v234_v28 = vmax.f32 %v190_v15, %v233_v21  ;;  %v228_v29 = vmax.f32 %v189_v16, %v227_v22  ;;  %v214_v30 = vmax.f32 %v212_v11, %v213_v17 }
  0xb2   :  { %v224_v26 = vmax.f32 %v222_v13, %v223_v19  ;;  %v218_v27 = vmax.f32 %v216_v14, %v217_v20 }
  0xb3   :  { %v254_v31 = vsel %vm253_vm8, %v202_v25, %v196_v24  ;;  %v235_v37 = vrot.slane %v234_v28, 2  ;;  %v229_v32 = vrot.slane %v228_v29, 2 }
  0xb4   :  { %v256_v33 = vsel %vm255_vm9, %v208_v23, %v254_v31  ;;  %v225_v35 = vrot.slane %v224_v26, 1  ;;  %v219_v36 = vrot.slane %v218_v27, 1 }
  0xb5   :  { %v258_v39 = vsel %vm257_vm10, %v214_v30, %v256_v33  ;;  %v236_v41 = vmax.f32 %v234_v28, %v235_v37  ;;  %v230_v42 = vmax.f32 %v228_v29, %v229_v32 }
  0xb6   :  { %v220_v34 = vmax.f32 %v218_v27, %v219_v36  ;;  %v226_v43 = vmax.f32 %v224_v26, %v225_v35 }
  0xb7   :  { %v237_v44 = vrot.slane %v236_v41, 1  ;;  %v231_v46 = vrot.slane %v230_v42, 1 }
  0xb8   :  { %v260_v45 = vsel %vm259_vm11, %v220_v34, %v258_v39 }
  0xb9   :  { %v238_v47 = vmax.f32 %v236_v41, %v237_v44  ;;  %v232_v48 = vmax.f32 %v230_v42, %v231_v46  ;;  %v262_v49 = vsel %vm261_vm12, %v226_v43, %v260_v45 }
  0xbb   :  { %v264_v50 = vsel %vm263_vm13, %v232_v48, %v262_v49 }
  0xbc   :  { %v266_v51 = vsel %vm265_vm14, %v238_v47, %v264_v50 }
  0xbd   :  { %v268_v52 = vmax.f32 %v266_v51, 0.0 }
  0xbf   :  { %269 = vst [vmem:[#allocation7] sm:$0xff] %v268_v52 }
  0xc0   :  { %363 = shalt.err (!%p360_p6)
}
  0xc1   :  { %s364_s10 = scalar_lea.hbm %s510_s2, 128 }
  0xc2   :  { %p365_p7 = scmp.ne.s32.totalorder %s510_s2, %s364_s10  ;;  %p368_p8 = scmp.lt.u32.totalorder %s364_s10, %s510_s2 }
  0xc4   :  { %p370_p9 = pnand %p368_p8, %p365_p7 }
  0xc6   :  { %373 = shalt.err (!%p370_p9)
}
  0xc7   :  { %279 = dma.vmem_to_hbm [thread:$0]  %s277_s6, 128, %s510_s2, [#allocation4]  }
  0xc8   :  { %378 = dma.done.wait [#allocation4], 128  }
  0xc9   :  { %379 = vsyncadd [#allocation4], 4294967168 }
  0xca   :  { %283 = vsyncpa [#allocation3], 1 }
  0xcb   :  { %284 = vsyncpa [#allocation6], 1 }
  0xcc   :  { %285 = vsyncpa [#allocation4], 1 }

</bundles_post_ra>
